<compile_context>
chip_gen: v5e
topology: v5e:2x2
jax: 0.10.0
libtpu: 0.0.40
codegen_flags: <defaults>
</compile_context>

<pallas_src>
import functools

import numpy as np
import jax
import jax.numpy as jnp
from jax import lax
from jax.experimental import pallas as pl
from jax.experimental.pallas import tpu as pltpu


def _round_up(x, m):
    return (x + m - 1) // m * m


# ---------------------------------------------------------------------------
# Fused kernel
# ---------------------------------------------------------------------------
def textcnn_fused_kernel(x_ref, wconv_ref, cbias_ref, thr_ref, fcw_ref, fcb_ref,
                         o_ref, xp_ref, *, k_max):
    """Whole TextCNN forward in one kernel.

    x_ref    : (B, L, E_pad)          f32   embedded input (channel squeezed)
    wconv_ref: (k_max*E_pad, F_pad)   bf16  packed conv weights, all branches
    cbias_ref: (1, F_pad)             f32   packed conv biases
    thr_ref  : (1, F_pad)             i32   per-column valid time length L-k+1
    fcw_ref  : (F_pad, C_pad)         bf16  FC weight (zero rows for padding)
    fcb_ref  : (1, C_pad)             f32   FC bias
    o_ref    : (B, C_pad)             f32   logits (lane-dense padded)
    xp_ref   : (B, L+k_max-1, E_pad)  f32   VMEM scratch (zero-padded x)
    """
    B, L, E = x_ref.shape
    F_pad = wconv_ref.shape[1]

    # Zero-padded copy of x in VMEM (so every shifted view has L rows; the
    # padded rows only reach positions that get masked or zero weights).
    xp_ref[:, :L, :] = x_ref[...]
    xp_ref[:, L:, :] = jnp.zeros((B, k_max - 1, E), jnp.float32)

    # In-VMEM "im2col": stack the k_max time-shifted views along lanes.
    patches = jnp.concatenate(
        [xp_ref[:, i:i + L, :] for i in range(k_max)], axis=-1)   # (B, L, k_max*E)
    pf = patches.reshape(B * L, k_max * E).astype(jnp.bfloat16)   # fold batch into M

    # One lane-dense MXU matmul for all conv branches, f32 accumulation.
    y = jnp.dot(pf, wconv_ref[...],
                preferred_element_type=jnp.float32)               # (B*L, F_pad)
    y = y.reshape(B, L, F_pad)

    # Mask time positions past each branch's valid length, then max over time.
    t = lax.broadcasted_iota(jnp.int32, (B, L, F_pad), 1)
    valid = t < thr_ref[...].reshape(1, 1, F_pad)
    y = jnp.where(valid, y, -1e30)
    m = jnp.max(y, axis=1)                                        # (B, F_pad)

    # Bias + ReLU hoisted out of the T dimension (f32 epilogue, v5e-safe).
    feat = jnp.maximum(m + cbias_ref[...], 0.0)                   # (B, F_pad)

    # TODO(synk): F.dropout (p=0.5, training) is stochastic; identity (eval mode).

    logits = jnp.dot(feat.astype(jnp.bfloat16), fcw_ref[...],
                     preferred_element_type=jnp.float32) + fcb_ref[...]
    o_ref[...] = logits


# ---------------------------------------------------------------------------
# Wrapper
# ---------------------------------------------------------------------------
def _full_spec(shape):
    nd = len(shape)
    return pl.BlockSpec(shape, lambda: (0,) * nd)


def textcnn_forward(x, wconv, cbias, thr, fcw, fcb, *, k_max):
    """x: (B, L, E_pad) f32 -> logits (B, C_pad) f32 (single fused kernel)."""
    B, L, E = x.shape
    C_pad = fcw.shape[1]
    kernel = functools.partial(textcnn_fused_kernel, k_max=k_max)
    return pl.pallas_call(
        kernel,
        out_shape=jax.ShapeDtypeStruct((B, C_pad), jnp.float32),
        in_specs=[
            _full_spec(x.shape),
            _full_spec(wconv.shape),
            _full_spec(cbias.shape),
            _full_spec(thr.shape),
            _full_spec(fcw.shape),
            _full_spec(fcb.shape),
        ],
        out_specs=_full_spec((B, C_pad)),
        scratch_shapes=[pltpu.VMEM((B, L + k_max - 1, E), jnp.float32)],
    )(x, wconv, cbias, thr, fcw, fcb)


# ---------------------------------------------------------------------------
# TextCNN model (packed/padded params on host, hot path in one Pallas kernel)
# ---------------------------------------------------------------------------
class TextCNNPallas:
    def __init__(self, key, *, sentence_max_size, emb_dim, filter_num,
                 kernel_list, label_size):
        self.L = sentence_max_size
        self.E = emb_dim
        self.F = filter_num
        self.kernel_list = list(kernel_list)
        self.k_max = max(self.kernel_list)
        self.C = label_size

        self.E_pad = _round_up(self.E, 128)
        self.F_tot = self.F * len(self.kernel_list)
        self.F_pad = _round_up(self.F_tot, 128)   # lane-dense packed filters
        self.C_pad = _round_up(self.C, 128)       # lane-dense output store

        keys = jax.random.split(key, 2 * len(self.kernel_list) + 2)

        # Packed conv weight slab: row i*E_pad+e, col j*F+f  <-  w_j[f, 0, i, e]
        wconv = np.zeros((self.k_max * self.E_pad, self.F_pad), np.float32)
        cbias = np.zeros((1, self.F_pad), np.float32)
        thr = np.full((1, self.F_pad), self.L, np.int32)
        for j, k in enumerate(self.kernel_list):
            kw, kb = keys[2 * j], keys[2 * j + 1]
            fan_in = k * self.E
            w = np.asarray(jax.random.normal(kw, (self.F, 1, k, self.E),
                                             jnp.float32)) / np.sqrt(fan_in)
            b = np.asarray(jax.random.normal(kb, (self.F,), jnp.float32)) * 0.01
            col = j * self.F
            for i in range(k):
                wconv[i * self.E_pad:i * self.E_pad + self.E,
                      col:col + self.F] = w[:, 0, i, :].T
            cbias[0, col:col + self.F] = b
            thr[0, col:col + self.F] = self.L - k + 1
        self.wconv = jnp.asarray(wconv, jnp.bfloat16)
        self.cbias = jnp.asarray(cbias)
        self.thr = jnp.asarray(thr)

        # FC layer, padded to (F_pad, C_pad); padding rows/cols are zero.
        fcw = np.zeros((self.F_pad, self.C_pad), np.float32)
        fcb = np.zeros((1, self.C_pad), np.float32)
        fcw[:self.F_tot, :self.C] = np.asarray(
            jax.random.normal(keys[-2], (self.F_tot, self.C), jnp.float32)
        ) / np.sqrt(self.F_tot)
        fcb[0, :self.C] = np.asarray(
            jax.random.normal(keys[-1], (self.C,), jnp.float32)) * 0.01
        self.fcw = jnp.asarray(fcw, jnp.bfloat16)
        self.fcb = jnp.asarray(fcb)

    def __call__(self, xs):
        """xs: (B, 1, L, E) float32 (pre-embedded input, NCHW single channel)."""
        x = xs[:, 0, :, :]                       # (B, L, E)
        if self.E_pad != self.E:
            # At production sizes pad the embedding table instead; no-op here.
            x = jnp.pad(x, ((0, 0), (0, 0), (0, self.E_pad - self.E)))
        out = textcnn_forward(x, self.wconv, self.cbias, self.thr,
                              self.fcw, self.fcb, k_max=self.k_max)
        return out[:, :self.C]                   # (B, C)


# ---------------------------------------------------------------------------
# Main
# ---------------------------------------------------------------------------
if __name__ == "__main__":
    # Small, module-consistent shapes (scaled down from L=XMaxLen, E=300, F=100).
    B = 2            # batch
    L = 16           # sentence_max_size
    E = 128          # emb_dim
    F = 32           # filter_num
    C = 4            # label_size
    kernel_list = [1, 2, 3, 4, 5]

    key = jax.random.PRNGKey(0)
    k_model, k_x = jax.random.split(key)

    model = TextCNNPallas(
        k_model,
        sentence_max_size=L,
        emb_dim=E,
        filter_num=F,
        kernel_list=kernel_list,
        label_size=C,
    )

    # Deterministic stand-in for token(text): pre-embedded input (B, 1, L, E).
    xs = jax.random.normal(k_x, (B, 1, L, E), jnp.float32)

    out = model(xs)
    out = jax.block_until_ready(out)
    assert out.shape == (B, C), out.shape
    print("KERNEL_OK")
</pallas_src>

<mosaic_0001>
module attributes {stable_mosaic.version = 11 : i64} {
  func.func @textcnn_fused_kernel(%arg0: memref<2x16x128xf32, #tpu.memory_space<vmem>>, %arg1: memref<640x256xbf16, #tpu.memory_space<vmem>>, %arg2: memref<1x256xf32, #tpu.memory_space<vmem>>, %arg3: memref<1x256xi32, #tpu.memory_space<vmem>>, %arg4: memref<256x128xbf16, #tpu.memory_space<vmem>>, %arg5: memref<1x128xf32, #tpu.memory_space<vmem>>, %arg6: memref<2x128xf32, #tpu.memory_space<vmem>>, %arg7: memref<2x20x128xf32, #tpu.memory_space<vmem>>) attributes {dimension_semantics = [], scalar_prefetch = 0 : i64, scratch_operands = 1 : i64, tpu.core_type = #tpu.core_type<tc>} {
    %c0 = arith.constant 0 : index
    %c0_0 = arith.constant 0 : index
    %c0_1 = arith.constant 0 : index
    %0 = vector.load %arg0[%c0, %c0_0, %c0_1] : memref<2x16x128xf32, #tpu.memory_space<vmem>>, vector<2x16x128xf32>
    %c0_2 = arith.constant 0 : index
    %c0_3 = arith.constant 0 : index
    %c0_4 = arith.constant 0 : index
    %1 = vector.load %arg7[%c0_2, %c0_3, %c0_4] : memref<2x20x128xf32, #tpu.memory_space<vmem>>, vector<2x16x128xf32>
    tpu.vector_store %arg7[%c0_2, %c0_3, %c0_4], %0 {strides = array<i32>} : memref<2x20x128xf32, #tpu.memory_space<vmem>>, vector<2x16x128xf32>,
    %cst = arith.constant 0.000000e+00 : f32
    %2 = vector.broadcast %cst : f32 to vector<2x4x128xf32>
    %c0_5 = arith.constant 0 : index
    %c16 = arith.constant 16 : index
    %c0_6 = arith.constant 0 : index
    %3 = vector.load %arg7[%c0_5, %c16, %c0_6] : memref<2x20x128xf32, #tpu.memory_space<vmem>>, vector<2x4x128xf32>
    tpu.vector_store %arg7[%c0_5, %c16, %c0_6], %2 {strides = array<i32>} : memref<2x20x128xf32, #tpu.memory_space<vmem>>, vector<2x4x128xf32>,
    %c0_7 = arith.constant 0 : index
    %c0_8 = arith.constant 0 : index
    %c0_9 = arith.constant 0 : index
    %4 = vector.load %arg7[%c0_7, %c0_8, %c0_9] : memref<2x20x128xf32, #tpu.memory_space<vmem>>, vector<2x16x128xf32>
    %c0_10 = arith.constant 0 : index
    %c1 = arith.constant 1 : index
    %c0_11 = arith.constant 0 : index
    %5 = vector.load %arg7[%c0_10, %c1, %c0_11] : memref<2x20x128xf32, #tpu.memory_space<vmem>>, vector<2x16x128xf32>
    %c0_12 = arith.constant 0 : index
    %c2 = arith.constant 2 : index
    %c0_13 = arith.constant 0 : index
    %6 = vector.load %arg7[%c0_12, %c2, %c0_13] : memref<2x20x128xf32, #tpu.memory_space<vmem>>, vector<2x16x128xf32>
    %c0_14 = arith.constant 0 : index
    %c3 = arith.constant 3 : index
    %c0_15 = arith.constant 0 : index
    %7 = vector.load %arg7[%c0_14, %c3, %c0_15] : memref<2x20x128xf32, #tpu.memory_space<vmem>>, vector<2x16x128xf32>
    %c0_16 = arith.constant 0 : index
    %c4 = arith.constant 4 : index
    %c0_17 = arith.constant 0 : index
    %8 = vector.load %arg7[%c0_16, %c4, %c0_17] : memref<2x20x128xf32, #tpu.memory_space<vmem>>, vector<2x16x128xf32>
    %9 = tpu.concatenate %4, %5, %6, %7, %8 in 2 : vector<2x16x128xf32>, vector<2x16x128xf32>, vector<2x16x128xf32>, vector<2x16x128xf32>, vector<2x16x128xf32> -> vector<2x16x640xf32>
    %10 = vector.shape_cast %9 : vector<2x16x640xf32> to vector<32x640xf32>
    %11 = arith.truncf %10 : vector<32x640xf32> to vector<32x640xbf16>
    %c0_18 = arith.constant 0 : index
    %c0_19 = arith.constant 0 : index
    %12 = vector.load %arg1[%c0_18, %c0_19] : memref<640x256xbf16, #tpu.memory_space<vmem>>, vector<640x256xbf16>
    %cst_20 = arith.constant dense<0.000000e+00> : vector<32x256xf32>
    %13 = tpu.matmul %11, %12, %cst_20 {dimension_numbers = #tpu.dot_dimension_numbers<[1], [0], [0], [1], [0, 0, 1, 1], [], []>} : vector<32x640xbf16>, vector<640x256xbf16>, vector<32x256xf32> -> vector<32x256xf32>
    %14 = vector.shape_cast %13 : vector<32x256xf32> to vector<2x16x256xf32>
    %15 = tpu.iota {dimensions = array<i32: 1>} : vector<2x16x256xi32>
    %c0_21 = arith.constant 0 : index
    %c0_22 = arith.constant 0 : index
    %16 = vector.load %arg3[%c0_21, %c0_22] : memref<1x256xi32, #tpu.memory_space<vmem>>, vector<1x256xi32>
    %17 = vector.shape_cast %16 : vector<1x256xi32> to vector<1x1x256xi32>
    %18 = vector.broadcast %17 : vector<1x1x256xi32> to vector<2x16x256xi32>
    %19 = arith.cmpi slt, %15, %18 : vector<2x16x256xi32>
    %cst_23 = arith.constant -1.000000e+30 : f32
    %20 = vector.broadcast %cst_23 : f32 to vector<2x16x256xf32>
    %21 = arith.select %19, %14, %20 : vector<2x16x256xi1>, vector<2x16x256xf32>
    %cst_24 = arith.constant dense<0xFF800000> : vector<2x256xf32>
    %22 = vector.multi_reduction <maximumf>, %21, %cst_24 [1] : vector<2x16x256xf32> to vector<2x256xf32>
    %c0_25 = arith.constant 0 : index
    %c0_26 = arith.constant 0 : index
    %23 = vector.load %arg2[%c0_25, %c0_26] : memref<1x256xf32, #tpu.memory_space<vmem>>, vector<1x256xf32>
    %24 = vector.broadcast %23 : vector<1x256xf32> to vector<2x256xf32>
    %25 = arith.addf %22, %24 : vector<2x256xf32>
    %cst_27 = arith.constant 0.000000e+00 : f32
    %26 = vector.broadcast %cst_27 : f32 to vector<2x256xf32>
    %27 = arith.maximumf %25, %26 : vector<2x256xf32>
    %28 = arith.truncf %27 : vector<2x256xf32> to vector<2x256xbf16>
    %c0_28 = arith.constant 0 : index
    %c0_29 = arith.constant 0 : index
    %29 = vector.load %arg4[%c0_28, %c0_29] : memref<256x128xbf16, #tpu.memory_space<vmem>>, vector<256x128xbf16>
    %cst_30 = arith.constant dense<0.000000e+00> : vector<2x128xf32>
    %30 = tpu.matmul %28, %29, %cst_30 {dimension_numbers = #tpu.dot_dimension_numbers<[1], [0], [0], [1], [0, 0, 1, 1], [], []>} : vector<2x256xbf16>, vector<256x128xbf16>, vector<2x128xf32> -> vector<2x128xf32>
    %c0_31 = arith.constant 0 : index
    %c0_32 = arith.constant 0 : index
    %31 = vector.load %arg5[%c0_31, %c0_32] : memref<1x128xf32, #tpu.memory_space<vmem>>, vector<1x128xf32>
    %32 = vector.broadcast %31 : vector<1x128xf32> to vector<2x128xf32>
    %33 = arith.addf %30, %32 : vector<2x128xf32>
    %c0_33 = arith.constant 0 : index
    %c0_34 = arith.constant 0 : index
    %34 = vector.load %arg6[%c0_33, %c0_34] : memref<2x128xf32, #tpu.memory_space<vmem>>, vector<2x128xf32>
    tpu.vector_store %arg6[%c0_33, %c0_34], %33 {strides = array<i32>} : memref<2x128xf32, #tpu.memory_space<vmem>>, vector<2x128xf32>,
    return
  }
}

</mosaic_0001>

<bundles_post_ra>
// kernel: tpu_custom_call.1
= control target key start
LH: loop header
LB: loop body
LE: loop exit
PB: predicated region body
PF: predicated region fallthrough
CT: control target
= control target key end

     0   :  { %11 = vsyncpa [#allocation4], 0  ;;  %s1840_s0 = inlined_call_operand.hbm [shape: f32[2,16,128], index: 0, kind: input, shape index: {}]   ;;  %s1841_s1 = inlined_call_operand.hbm [shape: bf16[640,256], index: 1, kind: input, shape index: {}]   ;;  %s1842_s2 = inlined_call_operand.hbm [shape: f32[1,256], index: 2, kind: input, shape index: {}]   ;;  %s1843_s3 = inlined_call_operand.vmem [shape: s32[1,256], index: 3, kind: input, shape index: {}]   ;;  %s1844_s4 = inlined_call_operand.hbm [shape: bf16[256,128], index: 4, kind: input, shape index: {}]   ;;  %s1845_s5 = inlined_call_operand.vmem [shape: f32[1,128], index: 5, kind: input, shape index: {}]   ;;  %s1846_s6 = inlined_call_operand.hbm [shape: f32[2,128], index: 6, kind: output, shape index: {}]  }
   0x1   :  { %12 = vsyncpa [#allocation7], 0 }
   0x2   :  { %13 = vsyncpa [#allocation10], 0 }
   0x3   :  { %14 = vsyncpa [#allocation5], 0  ;;  %s32_s23 = sshll.u32 %s1841_s1, 4  ;;  %s1673_s24 = smov [#allocation6]   ;;  %s33_s23 = int_to_ptr.hbm [resolvable:$true] %s32_s23 }
   0x4   :  { %s34_s25 = sshll.u32 %s1673_s24, 4  ;;  %s19_s28 = sshll.u32 %s1840_s0, 4  ;;  %s35_s25 = int_to_ptr.vmem [resolvable:$true] %s34_s25  ;;  %s20_s28 = int_to_ptr.hbm [resolvable:$true] %s19_s28 }
   0x5   :  { %s1674_s29 = smov 128   ;;  %s1675_s30 = smov 8  }
   0x6   :  { %40 = dma.hbm_to_vmem [thread:$0]  %s33_s23, 10240, %s35_s25, [#allocation7], %s1674_s29, %s1674_s29, %s1675_s30  }
   0x7   :  { %s1676_s7 = smov [#allocation3]   ;;  %s46_s11 = sshll.u32 %s1842_s2, 4  ;;  %s47_s11 = int_to_ptr.hbm [resolvable:$true] %s46_s11 }
   0x8   :  { %s21_s8 = sshll.u32 %s1676_s7, 4  ;;  %s58_s13 = sshll.u32 %s1844_s4, 4  ;;  %s22_s8 = int_to_ptr.vmem [resolvable:$true] %s21_s8  ;;  %s59_s13 = int_to_ptr.hbm [resolvable:$true] %s58_s13 }
   0x9   :  { %27 = dma.hbm_to_vmem [thread:$0]  %s20_s28, 512, %s22_s8, [#allocation4], %s1674_s29, %s1674_s29, %s1675_s30  }
   0xa   :  { %s1677_s14 = smov [#allocation8]   ;;  %s1678_s0 = smov [#allocation9]  }
   0xb   :  { %s48_s15 = sshll.u32 %s1677_s14, 4  ;;  %s60_s16 = sshll.u32 %s1678_s0, 4  ;;  %s49_s15 = int_to_ptr.vmem [resolvable:$true] %s48_s15  ;;  %s61_s16 = int_to_ptr.vmem [resolvable:$true] %s60_s16 }
   0xc   :  { %51 = dma.hbm_to_vmem [thread:$0]  %s47_s11, 32, %s49_s15, [#allocation7]  }
   0xd   :  { %s1679_s17 = smov 64   ;;  %s1680_s18 = smov 4  }
   0xe   :  { %66 = dma.hbm_to_vmem [thread:$0]  %s59_s13, 2048, %s61_s16, [#allocation10], %s1679_s17, %s1679_s17, %s1680_s18  }
   0xf   :  { %1665 = dma.done.wait [#allocation4], 512  }
  0x10   :  { %1666 = vsyncadd [#allocation4], 4294966784 }
  0x11   :  { %1667 = dma.done.wait [#allocation7], 10272  }
  0x12   :  { %1668 = vsyncadd [#allocation7], 4294957024 }
  0x13   :  { %1669 = dma.done.wait [#allocation10], 2048  }
  0x14   :  { %1670 = vsyncadd [#allocation10], 4294965248  ;;  %v1681_v0 = vmov 0.0   ;;  %v1112_v1 = vld [vmem:[#allocation6 + $0x70] sm:$0xf]  ;;  %vm904_vm4 = vcmask 1041409  }
  0x15   :  { %93 = vst [vmem:[#allocation2 + $0x10] sm:$0xf] %v1681_v0  ;;  %v1453_v2 = vld [vmem:[#allocation6 + $0x74] sm:$0xf0]  ;;  %v1176_v3 = vld [vmem:[#allocation6 + $0xf0] sm:$0xf] }
  0x16   :  { %94 = vst [vmem:[#allocation2 + $0x28] sm:$0xf] %v1681_v0  ;;  %v1113_v4 = vor.u32 %v1453_v2, %v1112_v1  ;;  %v1469_v5 = vld [vmem:[#allocation6 + $0xf4] sm:$0xf0]  ;;  %v1240_v6 = vld [vmem:[#allocation6 + $0x170] sm:$0xf] }
  0x17   :  { %v1485_v7 = vld [vmem:[#allocation6 + $0x174] sm:$0xf0]  ;;  %v1177_v8 = vor.u32 %v1469_v5, %v1176_v3  ;;  %v1304_v10 = vld [vmem:[#allocation6 + $0x1f0] sm:$0xf]  ;;  %v1104_v12 = vld [vmem:[#allocation6 + $0x60] sm:$0xf] }
  0x18   :  { %v1241_v9 = vor.u32 %v1485_v7, %v1240_v6  ;;  %v1501_v11 = vld [vmem:[#allocation6 + $0x1f4] sm:$0xf0]  ;;  %605 = vmatpush.bf16.msra.mxu0 %v1113_v4  ;;  %v1451_v14 = vld [vmem:[#allocation6 + $0x64] sm:$0xf0]  ;;  %v1168_v15 = vld [vmem:[#allocation6 + $0xe0] sm:$0xf] }
  0x19   :  { %v1305_v13 = vor.u32 %v1501_v11, %v1304_v10  ;;  %v1467_v16 = vld [vmem:[#allocation6 + $0xe4] sm:$0xf0]  ;;  %624 = vmatpush.bf16.msra.mxu1 %v1177_v8  ;;  %v1105_v17 = vor.u32 %v1451_v14, %v1104_v12  ;;  %v1232_v19 = vld [vmem:[#allocation6 + $0x160] sm:$0xf]  ;;  %v1096_v24 = vld [vmem:[#allocation6 + $0x50] sm:$0xf] }
  0x1a   :  { %643 = vmatpush.bf16.msra.mxu2 %v1241_v9  ;;  %v1169_v18 = vor.u32 %v1467_v16, %v1168_v15  ;;  %v1483_v20 = vld [vmem:[#allocation6 + $0x164] sm:$0xf0]  ;;  %v1296_v21 = vld [vmem:[#allocation6 + $0x1e0] sm:$0xf]  ;;  %v1449_v25 = vld [vmem:[#allocation6 + $0x54] sm:$0xf0] }
  0x1b   :  { %662 = vmatpush.bf16.msra.mxu3 %v1305_v13  ;;  %v1233_v22 = vor.u32 %v1483_v20, %v1232_v19  ;;  %v1499_v23 = vld [vmem:[#allocation6 + $0x1e4] sm:$0xf0]  ;;  %v1160_v27 = vld [vmem:[#allocation6 + $0xd0] sm:$0xf]  ;;  %v1465_v28 = vld [vmem:[#allocation6 + $0xd4] sm:$0xf0]  ;;  %v1097_v30 = vor.u32 %v1449_v25, %v1096_v24 }
  0x1c   :  { %v1297_v26 = vor.u32 %v1499_v23, %v1296_v21  ;;  %v1224_v29 = vld [vmem:[#allocation6 + $0x150] sm:$0xf]  ;;  %606 = vmatpush.bf16.msra.mxu0 %v1105_v17  ;;  %v1481_v31 = vld [vmem:[#allocation6 + $0x154] sm:$0xf0]  ;;  %v1161_v34 = vor.u32 %v1465_v28, %v1160_v27  ;;  %v1088_v36 = vld [vmem:[#allocation6 + $0x40] sm:$0xf] }
  0x1d   :  { %v1288_v32 = vld [vmem:[#allocation6 + $0x1d0] sm:$0xf]  ;;  %v1497_v33 = vld [vmem:[#allocation6 + $0x1d4] sm:$0xf0]  ;;  %625 = vmatpush.bf16.msra.mxu1 %v1169_v18  ;;  %v1225_v35 = vor.u32 %v1481_v31, %v1224_v29  ;;  %v1447_v37 = vld [vmem:[#allocation6 + $0x44] sm:$0xf0] }
  0x1e   :  { %644 = vmatpush.bf16.msra.mxu2 %v1233_v22  ;;  %v1152_v38 = vld [vmem:[#allocation6 + $0xc0] sm:$0xf]  ;;  %v1289_v39 = vor.u32 %v1497_v33, %v1288_v32  ;;  %v1463_v40 = vld [vmem:[#allocation6 + $0xc4] sm:$0xf0]  ;;  %v1089_v45 = vor.u32 %v1447_v37, %v1088_v36  ;;  %v1080_v48 = vld [vmem:[#allocation6 + $0x30] sm:$0xf] }
  0x1f   :  { %663 = vmatpush.bf16.msra.mxu3 %v1297_v26  ;;  %v1216_v41 = vld [vmem:[#allocation6 + $0x140] sm:$0xf]  ;;  %v1479_v42 = vld [vmem:[#allocation6 + $0x144] sm:$0xf0]  ;;  %v1153_v46 = vor.u32 %v1463_v40, %v1152_v38  ;;  %v1445_v49 = vld [vmem:[#allocation6 + $0x34] sm:$0xf0] }
  0x20   :  { %v1280_v43 = vld [vmem:[#allocation6 + $0x1c0] sm:$0xf]  ;;  %v1495_v44 = vld [vmem:[#allocation6 + $0x1c4] sm:$0xf0]  ;;  %607 = vmatpush.bf16.msra.mxu0 %v1097_v30  ;;  %v1217_v47 = vor.u32 %v1479_v42, %v1216_v41  ;;  %v1144_v50 = vld [vmem:[#allocation6 + $0xb0] sm:$0xf]  ;;  %v1081_v57 = vor.u32 %v1445_v49, %v1080_v48 }
  0x21   :  { %626 = vmatpush.bf16.msra.mxu1 %v1161_v34  ;;  %v1281_v51 = vor.u32 %v1495_v44, %v1280_v43  ;;  %v1461_v52 = vld [vmem:[#allocation6 + $0xb4] sm:$0xf0]  ;;  %v1208_v53 = vld [vmem:[#allocation6 + $0x130] sm:$0xf]  ;;  %v1072_v60 = vld [vmem:[#allocation6 + $0x20] sm:$0xf] }
  0x22   :  { %645 = vmatpush.bf16.msra.mxu2 %v1225_v35  ;;  %v1477_v54 = vld [vmem:[#allocation6 + $0x134] sm:$0xf0]  ;;  %v1272_v55 = vld [vmem:[#allocation6 + $0x1b0] sm:$0xf]  ;;  %v1145_v58 = vor.u32 %v1461_v52, %v1144_v50  ;;  %v1443_v61 = vld [vmem:[#allocation6 + $0x24] sm:$0xf0] }
  0x23   :  { %664 = vmatpush.bf16.msra.mxu3 %v1289_v39  ;;  %v1493_v56 = vld [vmem:[#allocation6 + $0x1b4] sm:$0xf0]  ;;  %v1209_v59 = vor.u32 %v1477_v54, %v1208_v53  ;;  %v1136_v62 = vld [vmem:[#allocation6 + $0xa0] sm:$0xf]  ;;  %v1459_v0 = vld [vmem:[#allocation6 + $0xa4] sm:$0xf0]  ;;  %v1073_v6 = vor.u32 %v1443_v61, %v1072_v60 }
  0x24   :  { %608 = vmatpush.bf16.msra.mxu0 %v1089_v45  ;;  %v1273_v63 = vor.u32 %v1493_v56, %v1272_v55  ;;  %v1200_v1 = vld [vmem:[#allocation6 + $0x120] sm:$0xf]  ;;  %v1475_v2 = vld [vmem:[#allocation6 + $0x124] sm:$0xf0]  ;;  %v1064_v5 = vld [vmem:[#allocation6 + $0x10] sm:$0xf]  ;;  %v1137_v10 = vor.u32 %v1459_v0, %v1136_v62 }
  0x25   :  { %627 = vmatpush.bf16.msra.mxu1 %v1153_v46  ;;  %v1264_v3 = vld [vmem:[#allocation6 + $0x1a0] sm:$0xf]  ;;  %v1491_v4 = vld [vmem:[#allocation6 + $0x1a4] sm:$0xf0]  ;;  %v1441_v7 = vld [vmem:[#allocation6 + $0x14] sm:$0xf0]  ;;  %v1201_v11 = vor.u32 %v1475_v2, %v1200_v1 }
  0x26   :  { %646 = vmatpush.bf16.msra.mxu2 %v1217_v47  ;;  %v1128_v8 = vld [vmem:[#allocation6 + $0x90] sm:$0xf]  ;;  %v1457_v9 = vld [vmem:[#allocation6 + $0x94] sm:$0xf0]  ;;  %v1265_v15 = vor.u32 %v1491_v4, %v1264_v3  ;;  %v85_v17 = vld [vmem:[#allocation3] sm:$0xff]  ;;  %v1065_v21 = vor.u32 %v1441_v7, %v1064_v5  ;;  %s1682_s20 = smov [#allocation11]  }
  0x27   :  { %665 = vmatpush.bf16.msra.mxu3 %v1281_v51  ;;  %v1192_v12 = vld [vmem:[#allocation6 + $0x110] sm:$0xf]  ;;  %v1473_v13 = vld [vmem:[#allocation6 + $0x114] sm:$0xf0]  ;;  %v86_v18 = vld [vmem:[#allocation3 + $0x8] sm:$0xff]  ;;  %89 = vst [vmem:[#allocation2] sm:$0xff] %v85_v17  ;;  %v1129_v24 = vor.u32 %v1457_v9, %v1128_v8 }
  0x28   :  { %609 = vmatpush.bf16.msra.mxu0 %v1081_v57  ;;  %v1256_v14 = vld [vmem:[#allocation6 + $0x190] sm:$0xf]  ;;  %v1489_v16 = vld [vmem:[#allocation6 + $0x194] sm:$0xf0]  ;;  %v1056_v19 = vld [vmem:[#allocation6] sm:$0xf]  ;;  %v1193_v25 = vor.u32 %v1473_v13, %v1192_v12  ;;  %v1734_v50 = vpack.c.bf16 %v86_v18, %v85_v17 }
  0x29   :  { %628 = vmatpush.bf16.msra.mxu1 %v1145_v58  ;;  %v1439_v20 = vld [vmem:[#allocation6 + $0x4] sm:$0xf0]  ;;  %v1120_v22 = vld [vmem:[#allocation6 + $0x80] sm:$0xf]  ;;  %90 = vst [vmem:[#allocation2 + $0x8] sm:$0xff] %v86_v18  ;;  %v1257_v29 = vor.u32 %v1489_v16, %v1256_v14  ;;  %v1730_v35 = vld [vmem:[#allocation3 + $0x10] sm:$0xff] }
  0x2a   :  { %647 = vmatpush.bf16.msra.mxu2 %v1209_v59  ;;  %v1455_v23 = vld [vmem:[#allocation6 + $0x84] sm:$0xf0]  ;;  %v1184_v26 = vld [vmem:[#allocation6 + $0x100] sm:$0xf]  ;;  %v1368_v31 = vld [vmem:[#allocation6 + $0x270] sm:$0xf]  ;;  %v1057_v36 = vor.u32 %v1439_v20, %v1056_v19 }
  0x2b   :  { %666 = vmatpush.bf16.msra.mxu3 %v1273_v63  ;;  %v1471_v27 = vld [vmem:[#allocation6 + $0x104] sm:$0xf0]  ;;  %v1248_v28 = vld [vmem:[#allocation6 + $0x180] sm:$0xf]  ;;  %v1517_v32 = vld [vmem:[#allocation6 + $0x274] sm:$0xf0]  ;;  %v1121_v40 = vor.u32 %v1455_v23, %v1120_v22 }
  0x2c   :  { %610 = vmatpush.bf16.msra.mxu0 %v1073_v6  ;;  %v1487_v30 = vld [vmem:[#allocation6 + $0x184] sm:$0xf0]  ;;  %v1452_v33 = vld [vmem:[#allocation6 + $0x74] sm:$0xf]  ;;  %v1114_v34 = vld [vmem:[#allocation6 + $0x78] sm:$0xf0]  ;;  %v1185_v41 = vor.u32 %v1471_v27, %v1184_v26  ;;  %v1369_v46 = vor.u32 %v1517_v32, %v1368_v31 }
  0x2d   :  { %629 = vmatpush.bf16.msra.mxu1 %v1137_v10  ;;  %v1468_v37 = vld [vmem:[#allocation6 + $0xf4] sm:$0xf]  ;;  %v1178_v38 = vld [vmem:[#allocation6 + $0xf8] sm:$0xf0]  ;;  %v1360_v44 = vld [vmem:[#allocation6 + $0x260] sm:$0xf]  ;;  %v1249_v45 = vor.u32 %v1487_v30, %v1248_v28  ;;  %v1117_v54 = vor.u32 %v1452_v33, %v1114_v34 }
  0x2e   :  { %648 = vmatpush.bf16.msra.mxu2 %v1201_v11  ;;  %v1732_v39 = vld [vmem:[#allocation3 + $0x18] sm:$0xff]  ;;  %v1484_v42 = vld [vmem:[#allocation6 + $0x174] sm:$0xf]  ;;  %v1515_v47 = vld [vmem:[#allocation6 + $0x264] sm:$0xf0]  ;;  %91 = vst [vmem:[#allocation2 + $0x18] sm:$0xff] %v1730_v35  ;;  %v1181_v60 = vor.u32 %v1468_v37, %v1178_v38 }
  0x2f   :  { %667 = vmatpush.bf16.msra.mxu3 %v1265_v15  ;;  %v1242_v43 = vld [vmem:[#allocation6 + $0x178] sm:$0xf0]  ;;  %v1450_v48 = vld [vmem:[#allocation6 + $0x64] sm:$0xf]  ;;  %v1106_v49 = vld [vmem:[#allocation6 + $0x68] sm:$0xf0]  ;;  %v1361_v63 = vor.u32 %v1515_v47, %v1360_v44  ;;  %v1750_v47 = vpack.c.bf16 %v1732_v39, %v1730_v35 }
  0x30   :  { %611 = vmatpush.bf16.msra.mxu0 %v1065_v21  ;;  %v99_v51 = vld [vmem:[#allocation2 + $0x1] sm:$0xff]  ;;  %v100_v52 = vld [vmem:[#allocation2 + $0x9] sm:$0xff]  ;;  %92 = vst [vmem:[#allocation2 + $0x20] sm:$0xff] %v1732_v39  ;;  %v1245_v62 = vor.u32 %v1484_v42, %v1242_v43  ;;  %v1466_v0 = vld [vmem:[#allocation6 + $0xe4] sm:$0xf]  ;;  %v1109_v3 = vor.u32 %v1450_v48, %v1106_v49  ;;  %s1040_s21 = sshll.u32 %s1682_s20, 4  ;;  %s1041_s21 = int_to_ptr.vmem [resolvable:$true] %s1040_s21 }
  0x31   :  { %630 = vmatpush.bf16.msra.mxu1 %v1129_v24  ;;  %v103_v53 = vld [vmem:[#allocation2 + $0x2] sm:$0xff]  ;;  %v1737_v55 = vpack.c.bf16 %v100_v52, %v99_v51  ;;  %v104_v56 = vld [vmem:[#allocation2 + $0xa] sm:$0xff]  ;;  %v1170_v1 = vld [vmem:[#allocation6 + $0xe8] sm:$0xf0]  ;;  %s1042_s24 = sshll.u32 %s1846_s6, 4  ;;  %s1043_s24 = int_to_ptr.hbm [resolvable:$true] %s1042_s24 }
  0x32   :  { %649 = vmatpush.bf16.msra.mxu2 %v1193_v25  ;;  %v107_v57 = vld [vmem:[#allocation2 + $0x3] sm:$0xff]  ;;  %v108_v58 = vld [vmem:[#allocation2 + $0xb] sm:$0xff]  ;;  %v1740_v59 = vpack.c.bf16 %v104_v56, %v103_v53  ;;  %v1482_v2 = vld [vmem:[#allocation6 + $0x164] sm:$0xf]  ;;  %v1173_v9 = vor.u32 %v1466_v0, %v1170_v1 }
  0x33   :  { %668 = vmatpush.bf16.msra.mxu3 %v1257_v29  ;;  %v1742_v61 = vpack.c.bf16 %v108_v58, %v107_v57  ;;  %v1234_v4 = vld [vmem:[#allocation6 + $0x168] sm:$0xf0]  ;;  %v1352_v5 = vld [vmem:[#allocation6 + $0x250] sm:$0xf]  ;;  %v1513_v6 = vld [vmem:[#allocation6 + $0x254] sm:$0xf0] }
  0x34   :  { %612 = vmatpush.bf16.msra.mxu0 %v1057_v36  ;;  %v1448_v7 = vld [vmem:[#allocation6 + $0x54] sm:$0xf]  ;;  %v1098_v8 = vld [vmem:[#allocation6 + $0x58] sm:$0xf0]  ;;  %v1237_v10 = vor.u32 %v1482_v2, %v1234_v4  ;;  %v1353_v11 = vor.u32 %v1513_v6, %v1352_v5  ;;  %v1344_v17 = vld [vmem:[#allocation6 + $0x240] sm:$0xf] }
  0x35   :  { %631 = vmatpush.bf16.msra.mxu1 %v1121_v40  ;;  %v1464_v12 = vld [vmem:[#allocation6 + $0xd4] sm:$0xf]  ;;  %v1162_v13 = vld [vmem:[#allocation6 + $0xd8] sm:$0xf0]  ;;  %v1101_v15 = vor.u32 %v1448_v7, %v1098_v8  ;;  %v1511_v18 = vld [vmem:[#allocation6 + $0x244] sm:$0xf0] }
  0x36   :  { %650 = vmatpush.bf16.msra.mxu2 %v1185_v41  ;;  %v1480_v14 = vld [vmem:[#allocation6 + $0x154] sm:$0xf]  ;;  %v1226_v16 = vld [vmem:[#allocation6 + $0x158] sm:$0xf0]  ;;  %v1446_v19 = vld [vmem:[#allocation6 + $0x44] sm:$0xf]  ;;  %v1165_v21 = vor.u32 %v1464_v12, %v1162_v13  ;;  %v1345_v25 = vor.u32 %v1511_v18, %v1344_v17 }
  0x37   :  { %669 = vmatpush.bf16.msra.mxu3 %v1249_v45  ;;  %613 = vmatmul.bf16.vlgmr.msra.gmra.mxu0 %v1734_v50  ;;  %v1090_v20 = vld [vmem:[#allocation6 + $0x48] sm:$0xf0]  ;;  %v1462_v22 = vld [vmem:[#allocation6 + $0xc4] sm:$0xf]  ;;  %v1229_v24 = vor.u32 %v1480_v14, %v1226_v16  ;;  %v1336_v28 = vld [vmem:[#allocation6 + $0x230] sm:$0xf] }
  0x38   :  { %681 = vmatpush.bf16.msrb.mxu0 %v1369_v46  ;;  %632 = vmatmul.bf16.vlgmr.msra.gmra.mxu1 %v1737_v55  ;;  %v1154_v23 = vld [vmem:[#allocation6 + $0xc8] sm:$0xf0]  ;;  %v1478_v26 = vld [vmem:[#allocation6 + $0x144] sm:$0xf]  ;;  %v1093_v29 = vor.u32 %v1446_v19, %v1090_v20  ;;  %v1509_v30 = vld [vmem:[#allocation6 + $0x234] sm:$0xf0] }
  0x39   :  { %700 = vmatpush.bf16.msrb.mxu1 %v1117_v54  ;;  %651 = vmatmul.bf16.vlgmr.msra.gmra.mxu2 %v1740_v59  ;;  %v1218_v27 = vld [vmem:[#allocation6 + $0x148] sm:$0xf0]  ;;  %v1444_v31 = vld [vmem:[#allocation6 + $0x34] sm:$0xf]  ;;  %v1082_v32 = vld [vmem:[#allocation6 + $0x38] sm:$0xf0]  ;;  %v1157_v37 = vor.u32 %v1462_v22, %v1154_v23  ;;  %v1337_v43 = vor.u32 %v1509_v30, %v1336_v28 }
  0x3a   :  { %719 = vmatpush.bf16.msrb.mxu2 %v1181_v60  ;;  %670 = vmatmul.bf16.vlgmr.msra.gmra.mxu3 %v1742_v61  ;;  %v101_v33 = vld [vmem:[#allocation2 + $0x19] sm:$0xff]  ;;  %v1460_v34 = vld [vmem:[#allocation6 + $0xb4] sm:$0xf]  ;;  %v1146_v36 = vld [vmem:[#allocation6 + $0xb8] sm:$0xf0]  ;;  %v1221_v42 = vor.u32 %v1478_v26, %v1218_v27  ;;  %v1085_v48 = vor.u32 %v1444_v31, %v1082_v32 }
  0x3b   :  { %738 = vmatpush.bf16.msrb.mxu3 %v1245_v62  ;;  %v102_v38 = vld [vmem:[#allocation2 + $0x21] sm:$0xff]  ;;  %v1210_v49 = vld [vmem:[#allocation6 + $0x138] sm:$0xf0]  ;;  %v1328_v51 = vld [vmem:[#allocation6 + $0x220] sm:$0xf]  ;;  %v1149_v58 = vor.u32 %v1460_v34, %v1146_v36 }
  0x3c   :  { %682 = vmatpush.bf16.msrb.mxu0 %v1361_v63  ;;  %v105_v40 = vld [vmem:[#allocation2 + $0x1a] sm:$0xff]  ;;  %v106_v41 = vld [vmem:[#allocation2 + $0x22] sm:$0xff]  ;;  %v1752_v53 = vpack.c.bf16 %v102_v38, %v101_v33  ;;  %v1442_v56 = vld [vmem:[#allocation6 + $0x24] sm:$0xf] }
  0x3d   :  { %701 = vmatpush.bf16.msrb.mxu1 %v1109_v3  ;;  %v109_v44 = vld [vmem:[#allocation2 + $0x1b] sm:$0xff]  ;;  %v110_v45 = vld [vmem:[#allocation2 + $0x23] sm:$0xff]  ;;  %v1754_v54 = vpack.c.bf16 %v106_v41, %v105_v40  ;;  %v1458_v35 = vld [vmem:[#allocation6 + $0xa4] sm:$0xf] }
  0x3e   :  { %720 = vmatpush.bf16.msrb.mxu2 %v1173_v9  ;;  %v1476_v46 = vld [vmem:[#allocation6 + $0x134] sm:$0xf]  ;;  %v1507_v52 = vld [vmem:[#allocation6 + $0x224] sm:$0xf0]  ;;  %v1074_v57 = vld [vmem:[#allocation6 + $0x28] sm:$0xf0]  ;;  %v1756_v60 = vpack.c.bf16 %v110_v45, %v109_v44 }
  0x3f   :  { %739 = vmatpush.bf16.msrb.mxu3 %v1237_v10  ;;  %v1213_v62 = vor.u32 %v1476_v46, %v1210_v49  ;;  %v1329_v63 = vor.u32 %v1507_v52, %v1328_v51  ;;  %v1138_v39 = vld [vmem:[#allocation6 + $0xa8] sm:$0xf0]  ;;  %v1474_v0 = vld [vmem:[#allocation6 + $0x124] sm:$0xf]  ;;  %v1077_v1 = vor.u32 %v1442_v56, %v1074_v57  ;;  %v1320_v3 = vld [vmem:[#allocation6 + $0x210] sm:$0xf] }
  0x40   :  { %683 = vmatpush.bf16.msrb.mxu0 %v1353_v11  ;;  %v1202_v2 = vld [vmem:[#allocation6 + $0x128] sm:$0xf0]  ;;  %v1505_v4 = vld [vmem:[#allocation6 + $0x214] sm:$0xf0]  ;;  %v1440_v5 = vld [vmem:[#allocation6 + $0x14] sm:$0xf]  ;;  %v1141_v7 = vor.u32 %v1458_v35, %v1138_v39 }
  0x41   :  { %702 = vmatpush.bf16.msrb.mxu1 %v1101_v15  ;;  %v1066_v6 = vld [vmem:[#allocation6 + $0x18] sm:$0xf0]  ;;  %v1456_v8 = vld [vmem:[#allocation6 + $0x94] sm:$0xf]  ;;  %v1205_v9 = vor.u32 %v1474_v0, %v1202_v2  ;;  %v1321_v10 = vor.u32 %v1505_v4, %v1320_v3  ;;  %v1312_v15 = vld [vmem:[#allocation6 + $0x200] sm:$0xf] }
  0x42   :  { %721 = vmatpush.bf16.msrb.mxu2 %v1165_v21  ;;  %v1130_v11 = vld [vmem:[#allocation6 + $0x98] sm:$0xf0]  ;;  %v1472_v12 = vld [vmem:[#allocation6 + $0x114] sm:$0xf]  ;;  %v1069_v14 = vor.u32 %v1440_v5, %v1066_v6  ;;  %v1503_v16 = vld [vmem:[#allocation6 + $0x204] sm:$0xf0] }
  0x43   :  { %740 = vmatpush.bf16.msrb.mxu3 %v1229_v24  ;;  %v1194_v13 = vld [vmem:[#allocation6 + $0x118] sm:$0xf0]  ;;  %v1438_v17 = vld [vmem:[#allocation6 + $0x4] sm:$0xf]  ;;  %v1058_v18 = vld [vmem:[#allocation6 + $0x8] sm:$0xf0]  ;;  %v1133_v21 = vor.u32 %v1456_v8, %v1130_v11 }
  0x44   :  { %684 = vmatpush.bf16.msrb.mxu0 %v1345_v25  ;;  %v1500_v19 = vld [vmem:[#allocation6 + $0x1f4] sm:$0xf]  ;;  %v1306_v20 = vld [vmem:[#allocation6 + $0x1f8] sm:$0xf0]  ;;  %v1197_v24 = vor.u32 %v1472_v12, %v1194_v13  ;;  %v1313_v25 = vor.u32 %v1503_v16, %v1312_v15  ;;  %v1454_v26 = vld [vmem:[#allocation6 + $0x84] sm:$0xf]  ;;  %v1061_v28 = vor.u32 %v1438_v17, %v1058_v18 }
  0x45   :  { %703 = vmatpush.bf16.msrb.mxu1 %v1093_v29  ;;  %v1516_v22 = vld [vmem:[#allocation6 + $0x274] sm:$0xf]  ;;  %v1370_v23 = vld [vmem:[#allocation6 + $0x278] sm:$0xf0]  ;;  %v1122_v27 = vld [vmem:[#allocation6 + $0x88] sm:$0xf0]  ;;  %v1309_v31 = vor.u32 %v1500_v19, %v1306_v20 }
  0x46   :  { %722 = vmatpush.bf16.msrb.mxu2 %v1157_v37  ;;  %v1470_v29 = vld [vmem:[#allocation6 + $0x104] sm:$0xf]  ;;  %v1186_v30 = vld [vmem:[#allocation6 + $0x108] sm:$0xf0]  ;;  %v111_v32 = vld [vmem:[#allocation2 + $0x4] sm:$0xff]  ;;  %v1373_v34 = vor.u32 %v1516_v22, %v1370_v23  ;;  %v1125_v36 = vor.u32 %v1454_v26, %v1122_v27 }
  0x47   :  { %741 = vmatpush.bf16.msrb.mxu3 %v1221_v42  ;;  %618 = vmatmul.bf16.gmra.mxu0 %v1750_v47  ;;  %v112_v33 = vld [vmem:[#allocation2 + $0xc] sm:$0xff]  ;;  %v1189_v37 = vor.u32 %v1470_v29, %v1186_v30  ;;  %v1498_v38 = vld [vmem:[#allocation6 + $0x1e4] sm:$0xf]  ;;  %v1298_v40 = vld [vmem:[#allocation6 + $0x1e8] sm:$0xf0] }
  0x48   :  { %685 = vmatpush.bf16.msrb.mxu0 %v1337_v43  ;;  %637 = vmatmul.bf16.gmra.mxu1 %v1752_v53  ;;  %v1762_v41 = vpack.c.bf16 %v112_v33, %v111_v32  ;;  %v1514_v42 = vld [vmem:[#allocation6 + $0x264] sm:$0xf]  ;;  %v1362_v43 = vld [vmem:[#allocation6 + $0x268] sm:$0xf0]  ;;  %v1301_v44 = vor.u32 %v1498_v38, %v1298_v40  ;;  %v1496_v46 = vld [vmem:[#allocation6 + $0x1d4] sm:$0xf] }
  0x49   :  { %704 = vmatpush.bf16.msrb.mxu1 %v1085_v48  ;;  %656 = vmatmul.bf16.gmra.mxu2 %v1754_v54  ;;  %v1365_v45 = vor.u32 %v1514_v42, %v1362_v43  ;;  %v1290_v48 = vld [vmem:[#allocation6 + $0x1d8] sm:$0xf0]  ;;  %v1512_v49 = vld [vmem:[#allocation6 + $0x254] sm:$0xf]  ;;  %v1494_v57 = vld [vmem:[#allocation6 + $0x1c4] sm:$0xf] }
  0x4a   :  { %723 = vmatpush.bf16.msrb.mxu2 %v1149_v58  ;;  %675 = vmatmul.bf16.gmra.mxu3 %v1756_v60  ;;  %v1354_v51 = vld [vmem:[#allocation6 + $0x258] sm:$0xf0]  ;;  %v1293_v52 = vor.u32 %v1496_v46, %v1290_v48  ;;  %v1282_v58 = vld [vmem:[#allocation6 + $0x1c8] sm:$0xf0]  ;;  %v1492_v0 = vld [vmem:[#allocation6 + $0x1b4] sm:$0xf] }
  0x4b   :  { %742 = vmatpush.bf16.msrb.mxu3 %v1213_v62  ;;  %v1357_v56 = vor.u32 %v1512_v49, %v1354_v51  ;;  %v1510_v62 = vld [vmem:[#allocation6 + $0x244] sm:$0xf]  ;;  %v1285_v35 = vor.u32 %v1494_v57, %v1282_v58  ;;  %v1508_v2 = vld [vmem:[#allocation6 + $0x234] sm:$0xf]  ;;  %v113_v3 = vld [vmem:[#allocation2 + $0x1c] sm:$0xff] }
  0x4c   :  { %686 = vmatpush.bf16.msrb.mxu0 %v1329_v63  ;;  %v1346_v63 = vld [vmem:[#allocation6 + $0x248] sm:$0xf0]  ;;  %v1490_v5 = vld [vmem:[#allocation6 + $0x1a4] sm:$0xf]  ;;  %v1488_v12 = vld [vmem:[#allocation6 + $0x194] sm:$0xf] }
  0x4d   :  { %705 = vmatpush.bf16.msrb.mxu1 %v1077_v1  ;;  %v1349_v39 = vor.u32 %v1510_v62, %v1346_v63  ;;  %v1274_v1 = vld [vmem:[#allocation6 + $0x1b8] sm:$0xf0]  ;;  %v1266_v6 = vld [vmem:[#allocation6 + $0x1a8] sm:$0xf0]  ;;  %v1506_v8 = vld [vmem:[#allocation6 + $0x224] sm:$0xf] }
  0x4e   :  { %724 = vmatpush.bf16.msrb.mxu2 %v1141_v7  ;;  %v1258_v13 = vld [vmem:[#allocation6 + $0x198] sm:$0xf0]  ;;  %v1486_v18 = vld [vmem:[#allocation6 + $0x184] sm:$0xf]  ;;  %v1250_v19 = vld [vmem:[#allocation6 + $0x188] sm:$0xf0] }
  0x4f   :  { %743 = vmatpush.bf16.msrb.mxu3 %v1205_v9  ;;  %v1330_v9 = vld [vmem:[#allocation6 + $0x228] sm:$0xf0]  ;;  %v1322_v15 = vld [vmem:[#allocation6 + $0x218] sm:$0xf0]  ;;  %v1261_v16 = vor.u32 %v1488_v12, %v1258_v13  ;;  %v1502_v20 = vld [vmem:[#allocation6 + $0x204] sm:$0xf]  ;;  %v1253_v22 = vor.u32 %v1486_v18, %v1250_v19 }
  0x50   :  { %687 = vmatpush.bf16.msrb.mxu0 %v1321_v10  ;;  %v1269_v10 = vor.u32 %v1490_v5, %v1266_v6  ;;  %v1333_v11 = vor.u32 %v1506_v8, %v1330_v9  ;;  %v1525_v30 = vld [vmem:[#allocation9 + $0x38] sm:$0xff]  ;;  %v1777_v42 = vld [vmem:[%s1843_s3] sm:$0x3]  ;;  %v1522_v48 = vld [vmem:[#allocation9 + $0x20] sm:$0xff] }
  0x51   :  { %706 = vmatpush.bf16.msrb.mxu1 %v1069_v14  ;;  %v1504_v14 = vld [vmem:[#allocation6 + $0x214] sm:$0xf]  ;;  %v799_v49 = vperm.slane %v1777_v42, 0  ;;  %v1521_v58 = vld [vmem:[#allocation9 + $0x18] sm:$0xff]  ;;  %v1519_v6 = vld [vmem:[#allocation9 + $0x8] sm:$0xff] }
  0x52   :  { %725 = vmatpush.bf16.msrb.mxu2 %v1133_v21  ;;  %v1325_v17 = vor.u32 %v1504_v14, %v1322_v15  ;;  %v1314_v21 = vld [vmem:[#allocation6 + $0x208] sm:$0xf0]  ;;  %v1518_v14 = vld [vmem:[#allocation9] sm:$0xff] }
  0x53   :  { %744 = vmatpush.bf16.msrb.mxu3 %v1197_v24  ;;  %v1317_v23 = vor.u32 %v1502_v20, %v1314_v21 }
  0x54   :  { %688 = vmatpush.bf16.msrb.mxu0 %v1313_v25 }
  0x55   :  { %707 = vmatpush.bf16.msrb.mxu1 %v1061_v28 }
  0x56   :  { %726 = vmatpush.bf16.msrb.mxu2 %v1125_v36  ;;  %v795_v36 = vlaneseq }
  0x57   :  { %745 = vmatpush.bf16.msrb.mxu3 %v1189_v37  ;;  %689 = vmatmul.bf16.vlgmr.msrb.gmra.mxu0 %v1762_v41  ;;  %v1523_v37 = vld [vmem:[#allocation9 + $0x28] sm:$0xff] }
  0x58   :  { %757 = vmatpush.bf16.msra.mxu0 %v1309_v31  ;;  %708 = vmatmul.bf16.vlgmr.msrb.gmra.mxu1 %v1734_v50  ;;  %v1338_v50 = vld [vmem:[#allocation6 + $0x238] sm:$0xf0] }
  0x59   :  { %776 = vmatpush.bf16.msra.mxu1 %v1373_v34  ;;  %727 = vmatmul.bf16.vlgmr.msrb.gmra.mxu2 %v1737_v55  ;;  %v114_v55 = vld [vmem:[#allocation2 + $0x24] sm:$0xff]  ;;  %v1341_v4 = vor.u32 %v1508_v2, %v1338_v50 }
  0x5a   :  { %746 = vmatmul.bf16.vlgmr.msrb.gmra.mxu3 %v1740_v59  ;;  %v1277_v59 = vor.u32 %v1492_v0, %v1274_v1  ;;  %v124_v7 = vpack.c.bf16 %v114_v55, %v113_v3  ;;  %1008 = vmatpush.bf16.msra.mxu2 %v1525_v30  ;;  %v1520_v3 = vld [vmem:[#allocation9 + $0x10] sm:$0xff]  ;;  %v1807_v30 = vld [vmem:[#allocation8] sm:$0x3] }
  0x5c   :  { %758 = vmatpush.bf16.msra.mxu0 %v1301_v44 }
  0x5d   :  { %777 = vmatpush.bf16.msra.mxu1 %v1365_v45  ;;  %v1779_v45 = vshrl.u32 %v795_v36, 7 }
  0x5f   :  { %v1783_v51 = vadd.s32 8, %v1779_v45  ;;  %vm1786_vm0 = vcmp.lt.s32.totalorder %v1779_v45, %v799_v49 }
  0x60   :  { %759 = vmatpush.bf16.msra.mxu0 %v1293_v52 }
  0x61   :  { %778 = vmatpush.bf16.msra.mxu1 %v1357_v56  ;;  %vm1791_vm1 = vcmp.lt.s32.totalorder %v1783_v51, %v799_v49 }
  0x64   :  { %760 = vmatpush.bf16.msra.mxu0 %v1285_v35 }
  0x65   :  { %779 = vmatpush.bf16.msra.mxu1 %v1349_v39  ;;  %v1529_v39 = vld [vmem:[#allocation9 + $0x58] sm:$0xff] }
  0x67   :  { %694 = vmatmul.bf16.gmra.mxu0 %v124_v7 }
  0x68   :  { %761 = vmatpush.bf16.msra.mxu0 %v1277_v59  ;;  %713 = vmatmul.bf16.gmra.mxu1 %v1750_v47 }
  0x69   :  { %780 = vmatpush.bf16.msra.mxu1 %v1341_v4  ;;  %732 = vmatmul.bf16.gmra.mxu2 %v1752_v53 }
  0x6a   :  { %751 = vmatmul.bf16.gmra.mxu3 %v1754_v54 }
  0x6c   :  { %762 = vmatpush.bf16.msra.mxu0 %v1269_v10 }
  0x6d   :  { %781 = vmatpush.bf16.msra.mxu1 %v1333_v11 }
  0x70   :  { %763 = vmatpush.bf16.msra.mxu0 %v1261_v16 }
  0x71   :  { %782 = vmatpush.bf16.msra.mxu1 %v1325_v17 }
  0x74   :  { %764 = vmatpush.bf16.msra.mxu0 %v1253_v22 }
  0x75   :  { %783 = vmatpush.bf16.msra.mxu1 %v1317_v23  ;;  %v1533_v23 = vld [vmem:[#allocation9 + $0x78] sm:$0xff] }
  0x76   :  { %1021 = vmatpush.bf16.msra.mxu3 %v1533_v23 }
  0x77   :  { %765 = vmatmul.bf16.vlgmr.msra.gmra.mxu0 %v1742_v61  ;;  %v1524_v61 = vld [vmem:[#allocation9 + $0x30] sm:$0xff] }
  0x78   :  { %784 = vmatmul.bf16.vlgmr.msra.gmra.mxu1 %v1762_v41  ;;  %1009 = vmatpush.bf16.msra.mxu2 %v1524_v61 }
  0x7c   :  { %1010 = vmatpush.bf16.msra.mxu2 %v1523_v37 }
  0x80   :  { %1011 = vmatpush.bf16.msra.mxu2 %v1522_v48 }
  0x84   :  { %1012 = vmatpush.bf16.msra.mxu2 %v1521_v58 }
  0x87   :  { %770 = vmatmul.bf16.gmra.mxu0 %v1756_v60 }
  0x88   :  { %789 = vmatmul.bf16.gmra.mxu1 %v124_v7  ;;  %1013 = vmatpush.bf16.msra.mxu2 %v1520_v3 }
  0x8c   :  { %1014 = vmatpush.bf16.msra.mxu2 %v1519_v6 }
  0x90   :  { %1015 = vmatpush.bf16.msra.mxu2 %v1518_v14 }
  0xb4   :  { %v614_v47 = vpop.f32.mrf.mxu0 }
  0xb5   :  { %v633_v53 = vpop.f32.mrf.mxu1 }
  0xb6   :  { %v634_v60 = vadd.f32 %v633_v53, %v614_v47 }
  0xbc   :  { %v616_v54 = vpop.f32.mrf.mxu0  ;;  %v652_v25 = vpop.f32.mrf.mxu2 }
  0xbd   :  { %v635_v24 = vpop.f32.mrf.mxu1  ;;  %v671_v26 = vpop.f32.mrf.mxu3  ;;  %v653_v40 = vadd.f32 %v652_v25, %v634_v60  ;;  %v843_v60 = vperm.slane %v1807_v30, 0 }
  0xbe   :  { %v636_v41 = vadd.f32 %v635_v24, %v616_v54 }
  0xbf   :  { %v672_v52 = vadd.f32 %v671_v26, %v653_v40  ;;  %v1532_v26 = vld [vmem:[#allocation9 + $0x70] sm:$0xff] }
  0xc0   :  { %1022 = vmatpush.bf16.msra.mxu3 %v1532_v26 }
  0xc4   :  { %v619_v27 = vpop.f32.mrf.mxu0  ;;  %v654_v29 = vpop.f32.mrf.mxu2 }
  0xc5   :  { %v638_v28 = vpop.f32.mrf.mxu1  ;;  %v673_v31 = vpop.f32.mrf.mxu3  ;;  %v655_v46 = vadd.f32 %v654_v29, %v636_v41 }
  0xc6   :  { %v639_v5 = vadd.f32 %v638_v28, %v619_v27 }
  0xc7   :  { %v674_v56 = vadd.f32 %v673_v31, %v655_v46  ;;  %v1530_v46 = vld [vmem:[#allocation9 + $0x60] sm:$0xff] }
  0xcc   :  { %v621_v32 = vpop.f32.mrf.mxu0  ;;  %v657_v34 = vpop.f32.mrf.mxu2 }
  0xcd   :  { %v640_v33 = vpop.f32.mrf.mxu1  ;;  %v676_v44 = vpop.f32.mrf.mxu3  ;;  %v658_v8 = vadd.f32 %v657_v34, %v639_v5  ;;  %v1531_v34 = vld [vmem:[#allocation9 + $0x68] sm:$0xff]  ;;  %v1528_v5 = vld [vmem:[#allocation9 + $0x50] sm:$0xff] }
  0xce   :  { %v641_v9 = vadd.f32 %v640_v33, %v621_v32  ;;  %1023 = vmatpush.bf16.msra.mxu3 %v1531_v34 }
  0xcf   :  { %v677_v15 = vadd.f32 %v676_v44, %v658_v8 }
  0xd2   :  { %1024 = vmatpush.bf16.msra.mxu3 %v1530_v46 }
  0xd4   :  { %v690_v38 = vpop.f32.mrf.mxu0  ;;  %v659_v62 = vpop.f32.mrf.mxu2 }
  0xd5   :  { %v709_v43 = vpop.f32.mrf.mxu1  ;;  %v691_v57 = vadd.f32 %v690_v38, %v672_v52  ;;  %v678_v55 = vpop.f32.mrf.mxu3  ;;  %v660_v13 = vadd.f32 %v659_v62, %v641_v9  ;;  %v800_v52 = vperm.slane %v1777_v42, 1 }
  0xd6   :  { %1025 = vmatpush.bf16.msra.mxu3 %v1529_v39 }
  0xd7   :  { %v805_v2 = vsel %vm1786_vm0, %v691_v57, -1e+30  ;;  %v679_v18 = vadd.f32 %v678_v55, %v660_v13  ;;  %vm1812_vm2 = vcmp.lt.s32.totalorder %v1779_v45, %v800_v52  ;;  %vm1817_vm3 = vcmp.lt.s32.totalorder %v1783_v51, %v800_v52  ;;  %v1527_v13 = vld [vmem:[#allocation9 + $0x48] sm:$0xff] }
  0xda   :  { %1026 = vmatpush.bf16.msra.mxu3 %v1528_v5 }
  0xdc   :  { %v692_v35 = vpop.f32.mrf.mxu0  ;;  %v728_v11 = vpop.f32.mrf.mxu2 }
  0xdd   :  { %v693_v0 = vadd.f32 %v692_v35, %v674_v56  ;;  %v711_v1 = vpop.f32.mrf.mxu1  ;;  %v747_v17 = vpop.f32.mrf.mxu3  ;;  %v729_v29 = vadd.f32 %v728_v11, %v709_v43 }
  0xde   :  { %1027 = vmatpush.bf16.msra.mxu3 %v1527_v13 }
  0xdf   :  { %v807_v50 = vsel %vm1791_vm1, %v693_v0, -1e+30  ;;  %v748_v38 = vadd.f32 %v747_v17, %v729_v29 }
  0xe0   :  { %v813_v59 = vmax.f32 %v805_v2, %v807_v50 }
  0xe2   :  { %v814_v4 = vrot.slane %v813_v59, 4 }
  0xe4   :  { %v695_v7 = vpop.f32.mrf.mxu0  ;;  %v815_v12 = vmax.f32 %v813_v59, %v814_v4  ;;  %v730_v24 = vpop.f32.mrf.mxu2 }
  0xe5   :  { %v1799_v10 = vpop.f32.mrf.mxu1  ;;  %v696_v19 = vadd.f32 %v695_v7, %v677_v15  ;;  %v749_v31 = vpop.f32.mrf.mxu3  ;;  %v731_v40 = vadd.f32 %v730_v24, %v711_v1 }
  0xe6   :  { %v816_v16 = vrot.slane %v815_v12, 2 }
  0xe7   :  { %v809_v53 = vsel %vm1786_vm0, %v696_v19, -1e+30  ;;  %v750_v56 = vadd.f32 %v749_v31, %v731_v40  ;;  %v1526_v19 = vld [vmem:[#allocation9 + $0x40] sm:$0xff] }
  0xe8   :  { %v817_v47 = vmax.f32 %v815_v12, %v816_v16  ;;  %1028 = vmatpush.bf16.msra.mxu3 %v1526_v19 }
  0xea   :  { %v818_v27 = vrot.slane %v817_v47, 1 }
  0xec   :  { %v697_v20 = vpop.f32.mrf.mxu0  ;;  %v819_v36 = vmax.f32 %v817_v47, %v818_v27  ;;  %v733_v43 = vpop.f32.mrf.mxu2 }
  0xed   :  { %v698_v21 = vadd.f32 %v697_v20, %v679_v18  ;;  %v1801_v22 = vpop.f32.mrf.mxu1  ;;  %v752_v1 = vpop.f32.mrf.mxu3  ;;  %v734_v8 = vadd.f32 %v733_v43, %v1799_v10 }
  0xee   :  { %v847_v48 = vadd.f32 %v843_v60, %v819_v36 }
  0xef   :  { %v811_v54 = vsel %vm1791_vm1, %v698_v21, -1e+30  ;;  %v753_v17 = vadd.f32 %v752_v1, %v734_v8 }
  0xf0   :  { %v827_v25 = vmax.f32 %v809_v53, %v811_v54  ;;  %v851_v0 = vmax.f32 %v847_v48, 0.0 }
  0xf2   :  { %v828_v28 = vrot.slane %v827_v25, 4  ;;  %v855_v6 = vpack.c.bf16 %v851_v0, %v851_v0 }
  0xf4   :  { %v829_v32 = vmax.f32 %v827_v25, %v828_v28  ;;  %v766_v33 = vpop.f32.mrf.mxu0  ;;  %v735_v51 = vpop.f32.mrf.mxu2  ;;  %v899_v15 = vunpack.c.l.b16 %v855_v6 }
  0xf5   :  { %v785_v61 = vpop.f32.mrf.mxu1  ;;  %v767_v44 = vadd.f32 %v766_v33, %v748_v38  ;;  %v736_v18 = vadd.f32 %v735_v51, %v1801_v22  ;;  %v754_v20 = vpop.f32.mrf.mxu3 }
  0xf6   :  { %v830_v37 = vrot.slane %v829_v32, 2 }
  0xf7   :  { %v786_v62 = vadd.f32 %v785_v61, %v767_v44  ;;  %v755_v53 = vadd.f32 %v754_v20, %v736_v18 }
  0xf8   :  { %v831_v41 = vmax.f32 %v829_v32, %v830_v37 }
  0xf9   :  { %v806_v59 = vsel %vm1812_vm2, %v786_v62, -1e+30 }
  0xfa   :  { %v832_v49 = vrot.slane %v831_v41, 1 }
  0xfc   :  { %v833_v57 = vmax.f32 %v831_v41, %v832_v49  ;;  %v768_v58 = vpop.f32.mrf.mxu0 }
  0xfd   :  { %v769_v63 = vadd.f32 %v768_v58, %v750_v56  ;;  %v787_v35 = vpop.f32.mrf.mxu1 }
  0xfe   :  { %v849_v2 = vadd.f32 %v843_v60, %v833_v57  ;;  %v844_v60 = vperm.slane %v1807_v30, 1  ;;  %v1544_v30 = vld [vmem:[%s1845_s5] ss:$0 sm:$0xff] }
  0xff   :  { %v788_v42 = vadd.f32 %v787_v35, %v769_v63 }
 0x100   :  { %v853_v55 = vmax.f32 %v849_v2, 0.0 }
 0x101   :  { %v808_v4 = vsel %vm1817_vm3, %v788_v42, -1e+30 }
 0x102   :  { %v857_v45 = vpack.c.bf16 %v853_v55, %v853_v55  ;;  %v820_v7 = vmax.f32 %v806_v59, %v808_v4 }
 0x104   :  { %v821_v9 = vrot.slane %v820_v7, 4  ;;  %v771_v11 = vpop.f32.mrf.mxu0  ;;  %v901_v12 = vunpack.c.l.b16 %v857_v45 }
 0x105   :  { %v790_v14 = vpop.f32.mrf.mxu1  ;;  %v772_v10 = vadd.f32 %v771_v11, %v753_v17 }
 0x106   :  { %v903_v16 = vrot.slane %v901_v12, 7  ;;  %v822_v21 = vmax.f32 %v820_v7, %v821_v9 }
 0x107   :  { %v791_v25 = vadd.f32 %v790_v14, %v772_v10 }
 0x108   :  { %v905_v23 = vsel %vm904_vm4, %v903_v16, %v899_v15  ;;  %v823_v54 = vrot.slane %v822_v21, 2 }
 0x109   :  { %v908_v47 = vpack.c.b16 %v905_v23, %v905_v23  ;;  %v810_v22 = vsel %vm1812_vm2, %v791_v25, -1e+30 }
 0x10a   :  { %v824_v29 = vmax.f32 %v822_v21, %v823_v54 }
 0x10b   :  { %1016 = vmatmul.bf16.vlgmr.msra.gmra.mxu2 %v908_v47 }
 0x10c   :  { %v773_v24 = vpop.f32.mrf.mxu0  ;;  %v825_v33 = vrot.slane %v824_v29, 1 }
 0x10d   :  { %v774_v26 = vadd.f32 %v773_v24, %v755_v53  ;;  %v792_v27 = vpop.f32.mrf.mxu1 }
 0x10e   :  { %v826_v36 = vmax.f32 %v824_v29, %v825_v33 }
 0x10f   :  { %v793_v28 = vadd.f32 %v792_v27, %v774_v26 }
 0x110   :  { %v848_v40 = vadd.f32 %v844_v60, %v826_v36 }
 0x111   :  { %v812_v31 = vsel %vm1817_vm3, %v793_v28, -1e+30 }
 0x112   :  { %v834_v32 = vmax.f32 %v810_v22, %v812_v31  ;;  %v852_v46 = vmax.f32 %v848_v40, 0.0 }
 0x114   :  { %v835_v61 = vrot.slane %v834_v32, 4  ;;  %v856_v49 = vpack.c.bf16 %v852_v46, %v852_v46 }
 0x116   :  { %v836_v34 = vmax.f32 %v834_v32, %v835_v61  ;;  %v900_v57 = vunpack.c.l.b16 %v856_v49 }
 0x118   :  { %v837_v37 = vrot.slane %v836_v34, 2 }
 0x11a   :  { %v838_v38 = vmax.f32 %v836_v34, %v837_v37 }
 0x11c   :  { %v839_v41 = vrot.slane %v838_v38, 1 }
 0x11e   :  { %v840_v44 = vmax.f32 %v838_v38, %v839_v41 }
 0x120   :  { %v850_v48 = vadd.f32 %v844_v60, %v840_v44 }
 0x122   :  { %v854_v43 = vmax.f32 %v850_v48, 0.0 }
 0x124   :  { %v858_v52 = vpack.c.bf16 %v854_v43, %v854_v43 }
 0x126   :  { %v902_v56 = vunpack.c.l.b16 %v858_v52 }
 0x128   :  { %v906_v58 = vrot.slane %v902_v56, 7 }
 0x12a   :  { %v907_v62 = vsel %vm904_vm4, %v906_v58, %v900_v57 }
 0x12b   :  { %v909_v63 = vpack.c.b16 %v907_v62, %v907_v62 }
 0x12d   :  { %1029 = vmatmul.bf16.vlgmr.msra.gmra.mxu3 %v909_v63 }
 0x18e   :  { %v1017_v35 = vpop.f32.mrf.mxu2 }
 0x18f   :  { %v1018_v0 = vadd.f32 %v1544_v30, %v1017_v35 }
 0x196   :  { %v1019_v39 = vpop.f32.mrf.mxu2 }
 0x1b0   :  { %v1030_v2 = vpop.f32.mrf.mxu3 }
 0x1b1   :  { %v1031_v1 = vadd.f32 %v1030_v2, %v1018_v0 }
 0x1b3   :  { %1034 = vst [vmem:[#allocation11] sm:$0x3] %v1031_v1 }
 0x1b4   :  { %1045 = dma.vmem_to_hbm [thread:$0]  %s1041_s21, 32, %s1043_s24, [#allocation5]  }
 0x1b8   :  { %v1032_v50 = vpop.f32.mrf.mxu3 }
 0x1b9   :  { %1671 = dma.done.wait [#allocation5], 32  }
 0x1ba   :  { %1672 = vsyncadd [#allocation5], 4294967264 }
 0x1bb   :  { %1050 = vsyncpa [#allocation4], 1 }
 0x1bc   :  { %1051 = vsyncpa [#allocation7], 1 }
 0x1bd   :  { %1052 = vsyncpa [#allocation10], 1 }
 0x1be   :  { %1053 = vsyncpa [#allocation5], 1 }

</bundles_post_ra>
